<compile_context>
chip_gen: v6e
topology: v6e:2x2x1
jax: 0.10.0
libtpu: 0.0.40
codegen_flags: <defaults>
</compile_context>

<pallas_src>
import functools

import jax
import jax.numpy as jnp
from jax.experimental import pallas as pl
from jax.experimental.pallas import tpu as pltpu


def _residual_linear_kernel(x_ref, w_ref, b_ref, r_ref, o_ref, acc_ref):
    """One (i, j, k) grid step of  out = x + relu(x @ W^T + b).

    x_ref  : (tm, tk)  activation slab (compute dtype, e.g. bf16)
    w_ref  : (tk, tn)  weight tile, already transposed to (in, out) layout
    b_ref  : (1,  tn)  bias tile       (block index constant over k)
    r_ref  : (tm, tn)  residual x tile (block index constant over k)
    o_ref  : (tm, tn)  output tile
    acc_ref: (tm, tn)  f32 accumulator scratch
    """
    k = pl.program_id(2)

    @pl.when(k == 0)
    def _():
        acc_ref[...] = jnp.zeros_like(acc_ref)

    # Plain MXU matmul; operands were cast / transposed once in the wrapper.
    acc_ref[...] += jnp.dot(x_ref[...], w_ref[...],
                            preferred_element_type=jnp.float32)

    # Epilogue only on the last K step: bias + ReLU + residual, then store.
    @pl.when(k == pl.num_programs(2) - 1)
    def _():
        h = jnp.maximum(acc_ref[...] + b_ref[...].astype(jnp.float32), 0.0)
        o_ref[...] = (r_ref[...].astype(jnp.float32) + h).astype(o_ref.dtype)


def _round_up(x, m):
    return (x + m - 1) // m * m


def _pick_feature_tile(d_pad, target):
    """Largest multiple of 128 dividing d_pad and <= target (d_pad % 128 == 0)."""
    best = 128
    t = 128
    while t <= min(target, d_pad):
        if d_pad % t == 0:
            best = t
        t += 128
    return best


def _pick_batch_tile(batch, target):
    """Sublane-aligned (x8) M tile, as large as possible (ideally = round_up(B,8)
    so W is streamed exactly once). Shrinks only to keep B-padding waste bounded."""
    b8 = _round_up(max(batch, 1), 8)
    tm = min(_round_up(target, 8), b8)
    # Keep padded rows <= 25% of the (8-aligned) batch.
    while tm > 8 and (_round_up(b8, tm) - b8) * 4 > b8:
        tm -= 8
    return tm


def residual_linear(x, weight, bias, *, tm=512, tn=512, tk=512,
                    compute_dtype=jnp.bfloat16):
    """Fused  out = x + relu(x @ weight^T + bias)  (ResidualLinear forward).

    x      : (B, d)   activations
    weight : (d, d)   PyTorch nn.Linear layout (out_features, in_features)
    bias   : (d,)
    compute_dtype : MXU operand dtype (bf16 default; None -> use x.dtype).
                    Accumulation is always f32; residual is added in x's dtype.
    """
    B, d = x.shape
    assert weight.shape == (d, d) and bias.shape == (d,)
    out_dtype = x.dtype
    cdt = jnp.dtype(compute_dtype) if compute_dtype is not None else jnp.dtype(x.dtype)

    # Lane-dense feature tiles, sublane-aligned batch tile, padded shapes.
    d_pad = _round_up(d, 128)
    tn = _pick_feature_tile(d_pad, tn)
    tk = _pick_feature_tile(d_pad, tk)
    tm = _pick_batch_tile(B, tm)
    B_pad = _round_up(_round_up(B, 8), tm)

    # One-time HBM-side prep (cheap XLA ops, amortized over the whole GEMM):
    #  * transpose W to (in, out) -> no per-tile XLU transpose in the kernel
    #  * cast MXU operands to compute_dtype (bf16 by default)
    #  * zero-pad B to a tile multiple and d to a lane multiple (128)
    w_t = jnp.swapaxes(weight, 0, 1).astype(cdt)
    x_mm = x.astype(cdt)
    x_res = x
    b2 = bias
    if d_pad != d:
        pd = d_pad - d
        w_t = jnp.pad(w_t, ((0, pd), (0, pd)))
        x_mm = jnp.pad(x_mm, ((0, 0), (0, pd)))
        x_res = jnp.pad(x_res, ((0, 0), (0, pd)))
        b2 = jnp.pad(b2, (0, pd))
    b2 = b2.reshape(1, d_pad)
    if B_pad != B:
        pb = B_pad - B
        x_mm = jnp.pad(x_mm, ((0, pb), (0, 0)))
        x_res = jnp.pad(x_res, ((0, pb), (0, 0)))

    grid = (B_pad // tm, d_pad // tn, d_pad // tk)

    # VMEM budget: double-buffered x / W / residual / bias / out tiles plus the
    # f32 accumulator, clamped to the physical VMEM of this chip generation.
    csz = cdt.itemsize
    xsz = jnp.dtype(x.dtype).itemsize
    osz = jnp.dtype(out_dtype).itemsize
    bsz = jnp.dtype(bias.dtype).itemsize
    footprint = (2 * tm * tk * csz      # x matmul operand (double-buffered)
                 + 2 * tk * tn * csz    # weight tile
                 + 2 * tm * tn * xsz    # residual tile
                 + 2 * tn * bsz         # bias tile
                 + 2 * tm * tn * osz    # output tile
                 + tm * tn * 4)         # f32 accumulator scratch
    try:
        phys_vmem = int(pltpu.get_tpu_info().vmem_capacity_bytes)
    except Exception:
        phys_vmem = 64 * 1024 * 1024   # conservative: v7x per-TC VMEM
    vmem_cap = phys_vmem * 7 // 8      # leave headroom for Mosaic internals
    vmem_limit = min(max(2 * footprint, 32 * 1024 * 1024), vmem_cap)
    vmem_limit = max(vmem_limit, footprint)

    cost = pl.CostEstimate(
        flops=2 * B_pad * d_pad * d_pad,
        transcendentals=0,
        bytes_accessed=(B_pad * d_pad * (csz + xsz + osz)          # x (mm + resid) + out
                        + (B_pad // tm) * d_pad * d_pad * csz      # weight passes
                        + d_pad * bsz))

    return pl.pallas_call(
        _residual_linear_kernel,
        out_shape=jax.ShapeDtypeStruct((B_pad, d_pad), out_dtype),
        grid_spec=pltpu.PrefetchScalarGridSpec(
            num_scalar_prefetch=0,
            grid=grid,
            in_specs=[
                pl.BlockSpec((tm, tk), lambda i, j, k: (i, k)),   # x (MXU LHS, compute dtype)
                pl.BlockSpec((tk, tn), lambda i, j, k: (k, j)),   # W^T tile (in, out) layout
                pl.BlockSpec((1, tn), lambda i, j, k: (0, j)),    # bias     (resident over k)
                pl.BlockSpec((tm, tn), lambda i, j, k: (i, j)),   # residual (resident over k)
            ],
            out_specs=pl.BlockSpec((tm, tn), lambda i, j, k: (i, j)),
            scratch_shapes=[pltpu.VMEM((tm, tn), jnp.float32)],
        ),
        compiler_params=pltpu.CompilerParams(
            dimension_semantics=("parallel", "parallel", "arbitrary"),
            vmem_limit_bytes=vmem_limit,
        ),
        cost_estimate=cost,
    )(x_mm, w_t, b2, x_res)[:B, :d]
    # TODO(synk): if VMEM-tight on v7x with very large tiles, set
    # pipeline_mode=pl.Buffered(1) on the bias/residual specs (their block index
    # only changes with j).


if __name__ == "__main__":
    # Small demo that also exercises both padding paths:
    #   d_int = 200 (not a multiple of 128 -> padded to 256)
    #   batch = 200 (not a multiple of 8   -> padded to 208)
    d_int = 200
    batch = 200

    key = jax.random.PRNGKey(0)
    kx, kw, kb = jax.random.split(key, 3)

    # Deterministic PyTorch nn.Linear-like init; weight kept in (out, in) layout.
    bound = 1.0 / (d_int ** 0.5)
    weight = jax.random.uniform(kw, (d_int, d_int), jnp.float32, -bound, bound)
    bias = jax.random.uniform(kb, (d_int,), jnp.float32, -bound, bound)
    x = jax.random.normal(kx, (batch, d_int), jnp.float32)

    # Pure-JAX reference (same math as the PyTorch forward).
    ref = x + jnp.maximum(x @ weight.T + bias, 0.0)

    # f32 MXU operands: tight check of tiling / fused epilogue correctness.
    out_f32 = jax.block_until_ready(residual_linear(x, weight, bias, compute_dtype=None))
    assert jnp.allclose(out_f32, ref, atol=1e-4, rtol=1e-4), "f32 path mismatch"

    # Default bf16 MXU operands (performance path): dtype-aware tolerance.
    out_bf16 = jax.block_until_ready(residual_linear(x, weight, bias))
    assert jnp.allclose(out_bf16, ref, atol=5e-2, rtol=5e-2), "bf16 path mismatch"

    print("KERNEL_OK")
</pallas_src>

<mosaic_0001>
module attributes {stable_mosaic.version = 11 : i64} {
  func.func @_residual_linear_kernel(%arg0: i32, %arg1: i32, %arg2: i32, %arg3: memref<200x256xf32, #tpu.memory_space<vmem>>, %arg4: memref<256x256xf32, #tpu.memory_space<vmem>>, %arg5: memref<1x256xf32, #tpu.memory_space<vmem>>, %arg6: memref<200x256xf32, #tpu.memory_space<vmem>>, %arg7: memref<200x256xf32, #tpu.memory_space<vmem>>, %arg8: memref<200x256xf32, #tpu.memory_space<vmem>>) attributes {dimension_semantics = [#tpu.dimension_semantics<parallel>, #tpu.dimension_semantics<parallel>, #tpu.dimension_semantics<arbitrary>], iteration_bounds = array<i64: 1, 1, 1>, scalar_prefetch = 0 : i64, scratch_operands = 1 : i64, tpu.core_type = #tpu.core_type<tc>, window_params = [{transform_indices = @transform_0, window_bounds = array<i64: 200, 256>}, {transform_indices = @transform_1, window_bounds = array<i64: 256, 256>}, {transform_indices = @transform_2, window_bounds = array<i64: 1, 256>}, {transform_indices = @transform_3, window_bounds = array<i64: 200, 256>}, {transform_indices = @transform_4, window_bounds = array<i64: 200, 256>}]} {
    %c0_i32 = arith.constant 0 : i32
    %0 = arith.cmpi eq, %arg2, %c0_i32 : i32
    %1 = arith.extui %0 : i1 to i32
    %c0_i32_0 = arith.constant 0 : i32
    %2 = arith.cmpi ne, %1, %c0_i32_0 : i32
    scf.if %2 {
      %cst_10 = arith.constant 0.000000e+00 : f32
      %12 = vector.broadcast %cst_10 : f32 to vector<200x256xf32>
      %c0_11 = arith.constant 0 : index
      %c0_12 = arith.constant 0 : index
      %13 = vector.load %arg8[%c0_11, %c0_12] : memref<200x256xf32, #tpu.memory_space<vmem>>, vector<200x256xf32>
      tpu.vector_store %arg8[%c0_11, %c0_12], %12 {strides = array<i32>} : memref<200x256xf32, #tpu.memory_space<vmem>>, vector<200x256xf32>,
    } else {
    }
    %c0 = arith.constant 0 : index
    %c0_1 = arith.constant 0 : index
    %3 = vector.load %arg8[%c0, %c0_1] : memref<200x256xf32, #tpu.memory_space<vmem>>, vector<200x256xf32>
    %c0_2 = arith.constant 0 : index
    %c0_3 = arith.constant 0 : index
    %4 = vector.load %arg3[%c0_2, %c0_3] : memref<200x256xf32, #tpu.memory_space<vmem>>, vector<200x256xf32>
    %c0_4 = arith.constant 0 : index
    %c0_5 = arith.constant 0 : index
    %5 = vector.load %arg4[%c0_4, %c0_5] : memref<256x256xf32, #tpu.memory_space<vmem>>, vector<256x256xf32>
    %cst = arith.constant dense<0.000000e+00> : vector<200x256xf32>
    %6 = tpu.matmul %4, %5, %cst {dimension_numbers = #tpu.dot_dimension_numbers<[1], [0], [0], [1], [0, 0, 1, 1], [], []>} : vector<200x256xf32>, vector<256x256xf32>, vector<200x256xf32> -> vector<200x256xf32>
    %7 = arith.addf %3, %6 : vector<200x256xf32>
    %c0_6 = arith.constant 0 : index
    %c0_7 = arith.constant 0 : index
    %8 = vector.load %arg8[%c0_6, %c0_7] : memref<200x256xf32, #tpu.memory_space<vmem>>, vector<200x256xf32>
    tpu.vector_store %arg8[%c0_6, %c0_7], %7 {strides = array<i32>} : memref<200x256xf32, #tpu.memory_space<vmem>>, vector<200x256xf32>,
    %c0_i32_8 = arith.constant 0 : i32
    %9 = arith.cmpi eq, %arg2, %c0_i32_8 : i32
    %10 = arith.extui %9 : i1 to i32
    %c0_i32_9 = arith.constant 0 : i32
    %11 = arith.cmpi ne, %10, %c0_i32_9 : i32
    scf.if %11 {
      %c0_10 = arith.constant 0 : index
      %c0_11 = arith.constant 0 : index
      %12 = vector.load %arg8[%c0_10, %c0_11] : memref<200x256xf32, #tpu.memory_space<vmem>>, vector<200x256xf32>
      %c0_12 = arith.constant 0 : index
      %c0_13 = arith.constant 0 : index
      %13 = vector.load %arg5[%c0_12, %c0_13] : memref<1x256xf32, #tpu.memory_space<vmem>>, vector<1x256xf32>
      %14 = vector.broadcast %13 : vector<1x256xf32> to vector<200x256xf32>
      %15 = arith.addf %12, %14 : vector<200x256xf32>
      %cst_14 = arith.constant 0.000000e+00 : f32
      %16 = vector.broadcast %cst_14 : f32 to vector<200x256xf32>
      %17 = arith.maximumf %15, %16 : vector<200x256xf32>
      %c0_15 = arith.constant 0 : index
      %c0_16 = arith.constant 0 : index
      %18 = vector.load %arg6[%c0_15, %c0_16] : memref<200x256xf32, #tpu.memory_space<vmem>>, vector<200x256xf32>
      %19 = arith.addf %18, %17 : vector<200x256xf32>
      %c0_17 = arith.constant 0 : index
      %c0_18 = arith.constant 0 : index
      %20 = vector.load %arg7[%c0_17, %c0_18] : memref<200x256xf32, #tpu.memory_space<vmem>>, vector<200x256xf32>
      tpu.vector_store %arg7[%c0_17, %c0_18], %19 {strides = array<i32>} : memref<200x256xf32, #tpu.memory_space<vmem>>, vector<200x256xf32>,
    } else {
    }
    return
  }
  func.func @transform_0(%arg0: i32, %arg1: i32, %arg2: i32) -> (i32, i32) {
    %c0_i32 = arith.constant 0 : i32
    return %arg0, %arg2 : i32, i32
  }
  func.func @transform_1(%arg0: i32, %arg1: i32, %arg2: i32) -> (i32, i32) {
    %c0_i32 = arith.constant 0 : i32
    return %arg2, %arg1 : i32, i32
  }
  func.func @transform_2(%arg0: i32, %arg1: i32, %arg2: i32) -> (i32, i32) {
    %c0_i32 = arith.constant 0 : i32
    %c0_i32_0 = arith.constant 0 : i32
    return %c0_i32, %arg1 : i32, i32
  }
  func.func @transform_3(%arg0: i32, %arg1: i32, %arg2: i32) -> (i32, i32) {
    %c0_i32 = arith.constant 0 : i32
    return %arg0, %arg1 : i32, i32
  }
  func.func @transform_4(%arg0: i32, %arg1: i32, %arg2: i32) -> (i32, i32) {
    %c0_i32 = arith.constant 0 : i32
    return %arg0, %arg1 : i32, i32
  }
}

</mosaic_0001>

<bundles_post_ra>
// kernel: tpu_custom_call.1
= control target key start
LH: loop header
LB: loop body
LE: loop exit
PB: predicated region body
PF: predicated region fallthrough
CT: control target
= control target key end

     0   :  { %9 = vsyncpa [#allocation4], 0  ;;  %s1193_s0 = inlined_call_operand.hbm [shape: f32[200,256], index: 0, kind: input, shape index: {}]   ;;  %s1194_s1 = inlined_call_operand.hbm [shape: f32[256,256], index: 1, kind: input, shape index: {}]   ;;  %s1195_s2 = inlined_call_operand.vmem [shape: f32[1,256], index: 2, kind: input, shape index: {}]   ;;  %s1196_s3 = inlined_call_operand.hbm [shape: f32[200,256], index: 3, kind: input, shape index: {}]   ;;  %s1197_s4 = inlined_call_operand.hbm [shape: f32[200,256], index: 4, kind: output, shape index: {}]  }
   0x1   :  { %10 = vsyncpa [#allocation7], 0 }
   0x2   :  { %11 = vsyncpa [#allocation5], 0  ;;  %s1081_s15 = smov [#allocation6]   ;;  %s1082_s17 = smov [#allocation3]  }
   0x3   :  { %s29_s16 = sshll.u32 %s1081_s15, 4  ;;  %s17_s18 = sshll.u32 %s1082_s17, 4  ;;  %s30_s16 = int_to_ptr.vmem [resolvable:$true] %s29_s16  ;;  %s18_s18 = int_to_ptr.vmem [resolvable:$true] %s17_s18 }
   0x4   :  { %s1003_s19 = scalar_lea.vmem %s30_s16, 8192  ;;  %p1008_p1 = scmp.lt.s32.totalorder %s30_s16, %s30_s16 }
   0x5   :  { %p1004_p0 = scmp.ne.s32.totalorder %s30_s16, %s1003_s19  ;;  %p1009_p2 = scmp.lt.s32.totalorder %s1003_s19, %s1003_s19 }
   0x7   :  { %p1010_p3 = por %p1009_p2, %p1008_p1 }
   0x9   :  { %p1011_p4 = pnand %p1010_p3, %p1004_p0 }
   0xb   :  { %1014 = shalt.err (!%p1011_p4)
}
   0xc   :  { %s1083_s20 = smov 256   ;;  %s1084_s21 = smov 16  }
   0xd   :  { %35 = dma.hbm_to_vmem [thread:$0]  %s1194_s1, 8192, %s30_s16, [#allocation7], %s1083_s20, %s1083_s20, %s1084_s21  }
   0xe   :  { %s1023_s24 = scalar_lea.vmem %s18_s18, 6400  ;;  %p1028_p6 = scmp.lt.s32.totalorder %s18_s18, %s18_s18 }
   0xf   :  { %p1024_p5 = scmp.ne.s32.totalorder %s18_s18, %s1023_s24  ;;  %p1029_p7 = scmp.lt.s32.totalorder %s1023_s24, %s1023_s24 }
  0x11   :  { %p1030_p8 = por %p1029_p7, %p1028_p6 }
  0x13   :  { %p1031_p9 = pnand %p1030_p8, %p1024_p5 }
  0x15   :  { %1034 = shalt.err (!%p1031_p9)
}
  0x16   :  { %23 = dma.hbm_to_vmem [thread:$0]  %s1193_s0, 6400, %s18_s18, [#allocation4], %s1083_s20, %s1083_s20, %s1084_s21  }
  0x17   :  { %s1085_s27 = smov [#allocation8]  }
  0x18   :  { %s43_s28 = sshll.u32 %s1085_s27, 4  ;;  %s44_s28 = int_to_ptr.vmem [resolvable:$true] %s43_s28 }
  0x19   :  { %s1043_s29 = scalar_lea.vmem %s44_s28, 6400  ;;  %p1048_p11 = scmp.lt.s32.totalorder %s44_s28, %s44_s28 }
  0x1a   :  { %p1044_p10 = scmp.ne.s32.totalorder %s44_s28, %s1043_s29  ;;  %p1049_p12 = scmp.lt.s32.totalorder %s1043_s29, %s1043_s29 }
  0x1c   :  { %p1050_p13 = por %p1049_p12, %p1048_p11 }
  0x1e   :  { %p1051_p0 = pnand %p1050_p13, %p1044_p10 }
  0x20   :  { %1054 = shalt.err (!%p1051_p0)
}
  0x21   :  { %49 = dma.hbm_to_vmem [thread:$0]  %s1196_s3, 6400, %s44_s28, [#allocation7], %s1083_s20, %s1083_s20, %s1084_s21  }
  0x22   :  { %1075 = dma.done.wait [#allocation4], 6400  }
  0x23   :  { %1076 = vsyncadd [#allocation4], 4294960896 }
  0x24   :  { %1077 = dma.done.wait [#allocation7], 14592  }
  0x25   :  { %1078 = vsyncadd [#allocation7], 4294952704  ;;  %v244_v0 = vld [vmem:[#allocation6 + $0xf8] sm:$0xff]  ;;  %v243_v1 = vld [vmem:[#allocation6 + $0xf0] sm:$0xff] }
  0x26   :  { %v242_v2 = vld [vmem:[#allocation6 + $0xe8] sm:$0xff]  ;;  %277 = vmatprep.subr.mxu0 %v244_v0  ;;  %925 = vmatprep.subr.mxu1 %v244_v0  ;;  %v241_v3 = vld [vmem:[#allocation6 + $0xe0] sm:$0xff]  ;;  %v240_v4 = vld [vmem:[#allocation6 + $0xd8] sm:$0xff] }
  0x27   :  { %278 = vmatpush1.msra.mxu0 %v243_v1  ;;  %957 = vmatpush1.msra.mxu1 %v243_v1  ;;  %v239_v5 = vld [vmem:[#allocation6 + $0xd0] sm:$0xff]  ;;  %v238_v6 = vld [vmem:[#allocation6 + $0xc8] sm:$0xff]  ;;  %v237_v7 = vld [vmem:[#allocation6 + $0xc0] sm:$0xff] }
  0x28   :  { %279 = vmatprep.subr.mxu0 %v242_v2  ;;  %926 = vmatprep.subr.mxu1 %v242_v2  ;;  %v236_v8 = vld [vmem:[#allocation6 + $0xb8] sm:$0xff]  ;;  %v235_v9 = vld [vmem:[#allocation6 + $0xb0] sm:$0xff]  ;;  %v234_v10 = vld [vmem:[#allocation6 + $0xa8] sm:$0xff] }
  0x29   :  { %280 = vmatpush1.msra.mxu0 %v241_v3  ;;  %958 = vmatpush1.msra.mxu1 %v241_v3  ;;  %v233_v11 = vld [vmem:[#allocation6 + $0xa0] sm:$0xff]  ;;  %v232_v12 = vld [vmem:[#allocation6 + $0x98] sm:$0xff]  ;;  %v231_v13 = vld [vmem:[#allocation6 + $0x90] sm:$0xff] }
  0x2a   :  { %281 = vmatprep.subr.mxu0 %v240_v4  ;;  %927 = vmatprep.subr.mxu1 %v240_v4  ;;  %v230_v14 = vld [vmem:[#allocation6 + $0x88] sm:$0xff]  ;;  %v229_v15 = vld [vmem:[#allocation6 + $0x80] sm:$0xff]  ;;  %v228_v16 = vld [vmem:[#allocation6 + $0x78] sm:$0xff] }
  0x2b   :  { %282 = vmatpush1.msra.mxu0 %v239_v5  ;;  %959 = vmatpush1.msra.mxu1 %v239_v5  ;;  %v227_v17 = vld [vmem:[#allocation6 + $0x70] sm:$0xff]  ;;  %v226_v18 = vld [vmem:[#allocation6 + $0x68] sm:$0xff]  ;;  %v225_v19 = vld [vmem:[#allocation6 + $0x60] sm:$0xff] }
  0x2c   :  { %283 = vmatprep.subr.mxu0 %v238_v6  ;;  %928 = vmatprep.subr.mxu1 %v238_v6  ;;  %v224_v20 = vld [vmem:[#allocation6 + $0x58] sm:$0xff]  ;;  %v223_v21 = vld [vmem:[#allocation6 + $0x50] sm:$0xff]  ;;  %v222_v22 = vld [vmem:[#allocation6 + $0x48] sm:$0xff] }
  0x2d   :  { %284 = vmatpush1.msra.mxu0 %v237_v7  ;;  %960 = vmatpush1.msra.mxu1 %v237_v7  ;;  %v221_v23 = vld [vmem:[#allocation6 + $0x40] sm:$0xff]  ;;  %v220_v24 = vld [vmem:[#allocation6 + $0x38] sm:$0xff]  ;;  %v219_v25 = vld [vmem:[#allocation6 + $0x30] sm:$0xff] }
  0x2e   :  { %285 = vmatprep.subr.mxu0 %v236_v8  ;;  %929 = vmatprep.subr.mxu1 %v236_v8  ;;  %v218_v26 = vld [vmem:[#allocation6 + $0x28] sm:$0xff]  ;;  %v217_v27 = vld [vmem:[#allocation6 + $0x20] sm:$0xff]  ;;  %v216_v28 = vld [vmem:[#allocation6 + $0x18] sm:$0xff] }
  0x2f   :  { %286 = vmatpush1.msra.mxu0 %v235_v9  ;;  %961 = vmatpush1.msra.mxu1 %v235_v9  ;;  %v215_v29 = vld [vmem:[#allocation6 + $0x10] sm:$0xff]  ;;  %v214_v30 = vld [vmem:[#allocation6 + $0x8] sm:$0xff]  ;;  %v213_v31 = vld [vmem:[#allocation6] sm:$0xff] }
  0x30   :  { %287 = vmatprep.subr.mxu0 %v234_v10  ;;  %930 = vmatprep.subr.mxu1 %v234_v10  ;;  %v276_v32 = vld [vmem:[#allocation6 + $0x1f8] sm:$0xff]  ;;  %v275_v33 = vld [vmem:[#allocation6 + $0x1f0] sm:$0xff]  ;;  %v274_v34 = vld [vmem:[#allocation6 + $0x1e8] sm:$0xff] }
  0x31   :  { %288 = vmatpush1.msra.mxu0 %v233_v11  ;;  %962 = vmatpush1.msra.mxu1 %v233_v11  ;;  %v273_v35 = vld [vmem:[#allocation6 + $0x1e0] sm:$0xff]  ;;  %v272_v36 = vld [vmem:[#allocation6 + $0x1d8] sm:$0xff]  ;;  %v271_v37 = vld [vmem:[#allocation6 + $0x1d0] sm:$0xff] }
  0x32   :  { %289 = vmatprep.subr.mxu0 %v232_v12  ;;  %931 = vmatprep.subr.mxu1 %v232_v12  ;;  %v270_v38 = vld [vmem:[#allocation6 + $0x1c8] sm:$0xff]  ;;  %v269_v39 = vld [vmem:[#allocation6 + $0x1c0] sm:$0xff]  ;;  %v268_v40 = vld [vmem:[#allocation6 + $0x1b8] sm:$0xff] }
  0x33   :  { %290 = vmatpush1.msra.mxu0 %v231_v13  ;;  %963 = vmatpush1.msra.mxu1 %v231_v13  ;;  %v267_v41 = vld [vmem:[#allocation6 + $0x1b0] sm:$0xff]  ;;  %v266_v42 = vld [vmem:[#allocation6 + $0x1a8] sm:$0xff]  ;;  %v265_v43 = vld [vmem:[#allocation6 + $0x1a0] sm:$0xff] }
  0x34   :  { %291 = vmatprep.subr.mxu0 %v230_v14  ;;  %932 = vmatprep.subr.mxu1 %v230_v14  ;;  %v264_v44 = vld [vmem:[#allocation6 + $0x198] sm:$0xff]  ;;  %v263_v45 = vld [vmem:[#allocation6 + $0x190] sm:$0xff]  ;;  %v262_v46 = vld [vmem:[#allocation6 + $0x188] sm:$0xff] }
  0x35   :  { %292 = vmatpush1.msra.mxu0 %v229_v15  ;;  %964 = vmatpush1.msra.mxu1 %v229_v15  ;;  %v261_v47 = vld [vmem:[#allocation6 + $0x180] sm:$0xff]  ;;  %v260_v48 = vld [vmem:[#allocation6 + $0x178] sm:$0xff]  ;;  %v259_v49 = vld [vmem:[#allocation6 + $0x170] sm:$0xff] }
  0x36   :  { %293 = vmatprep.subr.mxu0 %v228_v16  ;;  %933 = vmatprep.subr.mxu1 %v228_v16  ;;  %v258_v50 = vld [vmem:[#allocation6 + $0x168] sm:$0xff]  ;;  %v257_v51 = vld [vmem:[#allocation6 + $0x160] sm:$0xff]  ;;  %v256_v52 = vld [vmem:[#allocation6 + $0x158] sm:$0xff] }
  0x37   :  { %294 = vmatpush1.msra.mxu0 %v227_v17  ;;  %965 = vmatpush1.msra.mxu1 %v227_v17  ;;  %v255_v53 = vld [vmem:[#allocation6 + $0x150] sm:$0xff]  ;;  %v254_v54 = vld [vmem:[#allocation6 + $0x148] sm:$0xff]  ;;  %v253_v55 = vld [vmem:[#allocation6 + $0x140] sm:$0xff] }
  0x38   :  { %295 = vmatprep.subr.mxu0 %v226_v18  ;;  %934 = vmatprep.subr.mxu1 %v226_v18  ;;  %v252_v56 = vld [vmem:[#allocation6 + $0x138] sm:$0xff]  ;;  %v251_v57 = vld [vmem:[#allocation6 + $0x130] sm:$0xff]  ;;  %v250_v58 = vld [vmem:[#allocation6 + $0x128] sm:$0xff] }
  0x39   :  { %296 = vmatpush1.msra.mxu0 %v225_v19  ;;  %966 = vmatpush1.msra.mxu1 %v225_v19  ;;  %v249_v59 = vld [vmem:[#allocation6 + $0x120] sm:$0xff]  ;;  %v248_v60 = vld [vmem:[#allocation6 + $0x118] sm:$0xff]  ;;  %v247_v61 = vld [vmem:[#allocation6 + $0x110] sm:$0xff] }
  0x3a   :  { %297 = vmatprep.subr.mxu0 %v224_v20  ;;  %935 = vmatprep.subr.mxu1 %v224_v20  ;;  %v246_v62 = vld [vmem:[#allocation6 + $0x108] sm:$0xff]  ;;  %v164_v63 = vld [vmem:[#allocation3 + $0x8] sm:$0xff]  ;;  %v245_v0 = vld [vmem:[#allocation6 + $0x100] sm:$0xff] }
  0x3b   :  { %298 = vmatpush1.msra.mxu0 %v223_v21  ;;  %967 = vmatpush1.msra.mxu1 %v223_v21  ;;  %v163_v1 = vld [vmem:[#allocation3] sm:$0xff]  ;;  %v190_v2 = vld [vmem:[#allocation3 + $0xd8] sm:$0xff]  ;;  %v189_v4 = vld [vmem:[#allocation3 + $0xd0] sm:$0xff] }
  0x3c   :  { %299 = vmatprep.subr.mxu0 %v222_v22  ;;  %936 = vmatprep.subr.mxu1 %v222_v22  ;;  %v166_v3 = vld [vmem:[#allocation3 + $0x18] sm:$0xff]  ;;  %v192_v5 = vld [vmem:[#allocation3 + $0xe8] sm:$0xff]  ;;  %v165_v6 = vld [vmem:[#allocation3 + $0x10] sm:$0xff] }
  0x3d   :  { %300 = vmatpush1.msra.mxu0 %v221_v23  ;;  %968 = vmatpush1.msra.mxu1 %v221_v23  ;;  %v168_v7 = vld [vmem:[#allocation3 + $0x28] sm:$0xff]  ;;  %v191_v8 = vld [vmem:[#allocation3 + $0xe0] sm:$0xff]  ;;  %v194_v9 = vld [vmem:[#allocation3 + $0xf8] sm:$0xff] }
  0x3e   :  { %301 = vmatprep.subr.mxu0 %v220_v24  ;;  %937 = vmatprep.subr.mxu1 %v220_v24  ;;  %v167_v10 = vld [vmem:[#allocation3 + $0x20] sm:$0xff]  ;;  %v170_v11 = vld [vmem:[#allocation3 + $0x38] sm:$0xff]  ;;  %v193_v12 = vld [vmem:[#allocation3 + $0xf0] sm:$0xff] }
  0x3f   :  { %302 = vmatpush1.msra.mxu0 %v219_v25  ;;  %969 = vmatpush1.msra.mxu1 %v219_v25  ;;  %v196_v13 = vld [vmem:[#allocation3 + $0x108] sm:$0xff]  ;;  %v169_v14 = vld [vmem:[#allocation3 + $0x30] sm:$0xff]  ;;  %v195_v16 = vld [vmem:[#allocation3 + $0x100] sm:$0xff] }
  0x40   :  { %303 = vmatprep.subr.mxu0 %v218_v26  ;;  %938 = vmatprep.subr.mxu1 %v218_v26  ;;  %v172_v15 = vld [vmem:[#allocation3 + $0x48] sm:$0xff]  ;;  %v198_v17 = vld [vmem:[#allocation3 + $0x118] sm:$0xff]  ;;  %v171_v18 = vld [vmem:[#allocation3 + $0x40] sm:$0xff] }
  0x41   :  { %304 = vmatpush1.msra.mxu0 %v217_v27  ;;  %970 = vmatpush1.msra.mxu1 %v217_v27  ;;  %v174_v19 = vld [vmem:[#allocation3 + $0x58] sm:$0xff]  ;;  %v197_v20 = vld [vmem:[#allocation3 + $0x110] sm:$0xff]  ;;  %v200_v21 = vld [vmem:[#allocation3 + $0x128] sm:$0xff] }
  0x42   :  { %305 = vmatprep.subr.mxu0 %v216_v28  ;;  %939 = vmatprep.subr.mxu1 %v216_v28  ;;  %v173_v22 = vld [vmem:[#allocation3 + $0x50] sm:$0xff]  ;;  %v176_v23 = vld [vmem:[#allocation3 + $0x68] sm:$0xff]  ;;  %v199_v24 = vld [vmem:[#allocation3 + $0x120] sm:$0xff] }
  0x43   :  { %306 = vmatpush1.msra.mxu0 %v215_v29  ;;  %971 = vmatpush1.msra.mxu1 %v215_v29  ;;  %v202_v25 = vld [vmem:[#allocation3 + $0x138] sm:$0xff]  ;;  %v175_v26 = vld [vmem:[#allocation3 + $0x60] sm:$0xff]  ;;  %v201_v28 = vld [vmem:[#allocation3 + $0x130] sm:$0xff] }
  0x44   :  { %307 = vmatprep.subr.mxu0 %v214_v30  ;;  %940 = vmatprep.subr.mxu1 %v214_v30  ;;  %v178_v27 = vld [vmem:[#allocation3 + $0x78] sm:$0xff]  ;;  %v204_v29 = vld [vmem:[#allocation3 + $0x148] sm:$0xff]  ;;  %v177_v30 = vld [vmem:[#allocation3 + $0x70] sm:$0xff] }
  0x45   :  { %308 = vmatpush1.msra.mxu0 %v213_v31  ;;  %972 = vmatpush1.msra.mxu1 %v213_v31  ;;  %v180_v31 = vld [vmem:[#allocation3 + $0x88] sm:$0xff] }
  0x46   :  { %309 = vmatprep.subr.mxu0 %v276_v32  ;;  %941 = vmatprep.subr.mxu1 %v276_v32  ;;  %v203_v32 = vld [vmem:[#allocation3 + $0x140] sm:$0xff] }
  0x47   :  { %310 = vmatpush2.msra.mxu0 %v275_v33  ;;  %973 = vmatpush2.msra.mxu1 %v275_v33  ;;  %v206_v33 = vld [vmem:[#allocation3 + $0x158] sm:$0xff] }
  0x48   :  { %311 = vmatprep.subr.mxu0 %v274_v34  ;;  %942 = vmatprep.subr.mxu1 %v274_v34  ;;  %v179_v34 = vld [vmem:[#allocation3 + $0x80] sm:$0xff] }
  0x49   :  { %312 = vmatpush2.msra.mxu0 %v273_v35  ;;  %974 = vmatpush2.msra.mxu1 %v273_v35  ;;  %v182_v35 = vld [vmem:[#allocation3 + $0x98] sm:$0xff] }
  0x4a   :  { %313 = vmatprep.subr.mxu0 %v272_v36  ;;  %943 = vmatprep.subr.mxu1 %v272_v36  ;;  %v205_v36 = vld [vmem:[#allocation3 + $0x150] sm:$0xff] }
  0x4b   :  { %314 = vmatpush2.msra.mxu0 %v271_v37  ;;  %975 = vmatpush2.msra.mxu1 %v271_v37  ;;  %v208_v37 = vld [vmem:[#allocation3 + $0x168] sm:$0xff] }
  0x4c   :  { %315 = vmatprep.subr.mxu0 %v270_v38  ;;  %944 = vmatprep.subr.mxu1 %v270_v38  ;;  %v181_v38 = vld [vmem:[#allocation3 + $0x90] sm:$0xff] }
  0x4d   :  { %316 = vmatpush2.msra.mxu0 %v269_v39  ;;  %976 = vmatpush2.msra.mxu1 %v269_v39  ;;  %v184_v39 = vld [vmem:[#allocation3 + $0xa8] sm:$0xff] }
  0x4e   :  { %317 = vmatprep.subr.mxu0 %v268_v40  ;;  %945 = vmatprep.subr.mxu1 %v268_v40  ;;  %v207_v40 = vld [vmem:[#allocation3 + $0x160] sm:$0xff] }
  0x4f   :  { %318 = vmatpush2.msra.mxu0 %v267_v41  ;;  %977 = vmatpush2.msra.mxu1 %v267_v41  ;;  %v210_v41 = vld [vmem:[#allocation3 + $0x178] sm:$0xff] }
  0x50   :  { %319 = vmatprep.subr.mxu0 %v266_v42  ;;  %946 = vmatprep.subr.mxu1 %v266_v42  ;;  %v183_v42 = vld [vmem:[#allocation3 + $0xa0] sm:$0xff] }
  0x51   :  { %320 = vmatpush2.msra.mxu0 %v265_v43  ;;  %978 = vmatpush2.msra.mxu1 %v265_v43  ;;  %v186_v43 = vld [vmem:[#allocation3 + $0xb8] sm:$0xff] }
  0x52   :  { %321 = vmatprep.subr.mxu0 %v264_v44  ;;  %947 = vmatprep.subr.mxu1 %v264_v44  ;;  %v209_v44 = vld [vmem:[#allocation3 + $0x170] sm:$0xff] }
  0x53   :  { %322 = vmatpush2.msra.mxu0 %v263_v45  ;;  %979 = vmatpush2.msra.mxu1 %v263_v45  ;;  %v212_v45 = vld [vmem:[#allocation3 + $0x188] sm:$0xff] }
  0x54   :  { %323 = vmatprep.subr.mxu0 %v262_v46  ;;  %948 = vmatprep.subr.mxu1 %v262_v46  ;;  %v185_v46 = vld [vmem:[#allocation3 + $0xb0] sm:$0xff] }
  0x55   :  { %324 = vmatpush2.msra.mxu0 %v261_v47  ;;  %980 = vmatpush2.msra.mxu1 %v261_v47  ;;  %v188_v47 = vld [vmem:[#allocation3 + $0xc8] sm:$0xff] }
  0x56   :  { %325 = vmatprep.subr.mxu0 %v260_v48  ;;  %949 = vmatprep.subr.mxu1 %v260_v48  ;;  %v211_v48 = vld [vmem:[#allocation3 + $0x180] sm:$0xff] }
  0x57   :  { %326 = vmatpush2.msra.mxu0 %v259_v49  ;;  %981 = vmatpush2.msra.mxu1 %v259_v49  ;;  %v187_v49 = vld [vmem:[#allocation3 + $0xc0] sm:$0xff] }
  0x58   :  { %327 = vmatprep.subr.mxu0 %v258_v50  ;;  %950 = vmatprep.subr.mxu1 %v258_v50  ;;  %v647_v50 = vlaneseq }
  0x59   :  { %328 = vmatpush2.msra.mxu0 %v257_v51  ;;  %982 = vmatpush2.msra.mxu1 %v257_v51 }
  0x5a   :  { %329 = vmatprep.subr.mxu0 %v256_v52  ;;  %951 = vmatprep.subr.mxu1 %v256_v52  ;;  %v648_v51 = vshrl.u32 %v647_v50, 7 }
  0x5b   :  { %330 = vmatpush2.msra.mxu0 %v255_v53  ;;  %983 = vmatpush2.msra.mxu1 %v255_v53  ;;  %v645_v53 = vld [vmem:[%s1195_s2] sm:$0x3]  ;;  %s1086_s2 = smov [#allocation9]  }
  0x5c   :  { %331 = vmatprep.subr.mxu0 %v254_v54  ;;  %952 = vmatprep.subr.mxu1 %v254_v54  ;;  %v649_v52 = vsub.s32 0, %v648_v51  ;;  %v653_v54 = vsub.s32 1, %v648_v51  ;;  %s912_s5 = sshll.u32 %s1086_s2, 4  ;;  %s913_s5 = int_to_ptr.vmem [resolvable:$true] %s912_s5 }
  0x5d   :  { %332 = vmatpush2.msra.mxu0 %v253_v55  ;;  %984 = vmatpush2.msra.mxu1 %v253_v55  ;;  %s1055_s6 = scalar_lea.vmem %s913_s5, 6400  ;;  %p1060_p2 = scmp.lt.s32.totalorder %s913_s5, %s913_s5 }
  0x5e   :  { %333 = vmatprep.subr.mxu0 %v252_v56  ;;  %953 = vmatprep.subr.mxu1 %v252_v56  ;;  %v1133_v55 = vrot.slane %v645_v53, %v649_v52  ;;  %v1135_v56 = vrot.slane %v645_v53, %v653_v54  ;;  %p1056_p1 = scmp.ne.s32.totalorder %s913_s5, %s1055_s6  ;;  %p1061_p3 = scmp.lt.s32.totalorder %s1055_s6, %s1055_s6 }
  0x5f   :  { %334 = vmatpush2.msra.mxu0 %v251_v57  ;;  %985 = vmatpush2.msra.mxu1 %v251_v57 }
  0x60   :  { %335 = vmatprep.subr.mxu0 %v250_v58  ;;  %954 = vmatprep.subr.mxu1 %v250_v58  ;;  %p1062_p4 = por %p1061_p3, %p1060_p2 }
  0x61   :  { %336 = vmatpush2.msra.mxu0 %v249_v59  ;;  %986 = vmatpush2.msra.mxu1 %v249_v59  ;;  %v757_v59 = vld [vmem:[#allocation8] sm:$0xff] }
  0x62   :  { %337 = vmatprep.subr.mxu0 %v248_v60  ;;  %955 = vmatprep.subr.mxu1 %v248_v60  ;;  %p1063_p5 = pnand %p1062_p4, %p1056_p1 }
  0x63   :  { %338 = vmatpush2.msra.mxu0 %v247_v61  ;;  %987 = vmatpush2.msra.mxu1 %v247_v61 }
  0x64   :  { %339 = vmatprep.subr.mxu0 %v246_v62  ;;  %341 = vmatprep.mubr.f32.mxu0 %v164_v63 }
  0x65   :  { %340 = vmatpush2.msra.mxu0 %v245_v0  ;;  %956 = vmatprep.subr.mxu1 %v246_v62 }
  0x66   :  { %342 = vmatmul.mubr.f32.vlgmr.msra.gmra.mxu0 %v163_v1  ;;  %988 = vmatpush2.msra.mxu1 %v245_v0  ;;  %v758_v1 = vld [vmem:[#allocation8 + $0x8] sm:$0xff] }
  0x67   :  { %419 = vmatprep.mubr.f32.mxu1 %v190_v2  ;;  %347 = vmatprep.mubr.f32.mxu0 %v166_v3  ;;  %v783_v2 = vld [vmem:[#allocation8 + $0xd0] sm:$0xff] }
  0x68   :  { %420 = vmatmul.mubr.f32.vlgmr.msra.gmra.mxu1 %v189_v4 }
  0x69   :  { %425 = vmatprep.mubr.f32.mxu1 %v192_v5 }
  0x6a   :  { %348 = vmatmul.mubr.f32.gmra.mxu0 %v165_v6 }
  0x6b   :  { %353 = vmatprep.mubr.f32.mxu0 %v168_v7 }
  0x6c   :  { %426 = vmatmul.mubr.f32.gmra.mxu1 %v191_v8 }
  0x6d   :  { %431 = vmatprep.mubr.f32.mxu1 %v194_v9  ;;  %v759_v9 = vld [vmem:[#allocation8 + $0x10] sm:$0xff] }
  0x6e   :  { %354 = vmatmul.mubr.f32.gmra.mxu0 %v167_v10 }
  0x6f   :  { %359 = vmatprep.mubr.f32.mxu0 %v170_v11 }
  0x70   :  { %432 = vmatmul.mubr.f32.gmra.mxu1 %v193_v12 }
  0x71   :  { %437 = vmatprep.mubr.f32.mxu1 %v196_v13 }
  0x72   :  { %360 = vmatmul.mubr.f32.gmra.mxu0 %v169_v14 }
  0x73   :  { %365 = vmatprep.mubr.f32.mxu0 %v172_v15 }
  0x74   :  { %438 = vmatmul.mubr.f32.gmra.mxu1 %v195_v16  ;;  %v784_v16 = vld [vmem:[#allocation8 + $0xd8] sm:$0xff] }
  0x75   :  { %443 = vmatprep.mubr.f32.mxu1 %v198_v17 }
  0x76   :  { %366 = vmatmul.mubr.f32.gmra.mxu0 %v171_v18 }
  0x77   :  { %371 = vmatprep.mubr.f32.mxu0 %v174_v19  ;;  %v760_v19 = vld [vmem:[#allocation8 + $0x18] sm:$0xff] }
  0x78   :  { %444 = vmatmul.mubr.f32.gmra.mxu1 %v197_v20 }
  0x79   :  { %449 = vmatprep.mubr.f32.mxu1 %v200_v21 }
  0x7a   :  { %372 = vmatmul.mubr.f32.gmra.mxu0 %v173_v22 }
  0x7b   :  { %377 = vmatprep.mubr.f32.mxu0 %v176_v23 }
  0x7c   :  { %450 = vmatmul.mubr.f32.gmra.mxu1 %v199_v24 }
  0x7d   :  { %455 = vmatprep.mubr.f32.mxu1 %v202_v25  ;;  %v785_v25 = vld [vmem:[#allocation8 + $0xe0] sm:$0xff] }
  0x7e   :  { %378 = vmatmul.mubr.f32.gmra.mxu0 %v175_v26 }
  0x7f   :  { %383 = vmatprep.mubr.f32.mxu0 %v178_v27 }
  0x80   :  { %456 = vmatmul.mubr.f32.gmra.mxu1 %v201_v28 }
  0x81   :  { %461 = vmatprep.mubr.f32.mxu1 %v204_v29 }
  0x82   :  { %384 = vmatmul.mubr.f32.gmra.mxu0 %v177_v30  ;;  %v761_v30 = vld [vmem:[#allocation8 + $0x20] sm:$0xff] }
  0x83   :  { %389 = vmatprep.mubr.f32.mxu0 %v180_v31  ;;  %v786_v31 = vld [vmem:[#allocation8 + $0xe8] sm:$0xff] }
  0x84   :  { %462 = vmatmul.mubr.f32.gmra.mxu1 %v203_v32 }
  0x85   :  { %467 = vmatprep.mubr.f32.mxu1 %v206_v33 }
  0x86   :  { %390 = vmatmul.mubr.f32.gmra.mxu0 %v179_v34 }
  0x87   :  { %395 = vmatprep.mubr.f32.mxu0 %v182_v35 }
  0x88   :  { %468 = vmatmul.mubr.f32.gmra.mxu1 %v205_v36 }
  0x89   :  { %473 = vmatprep.mubr.f32.mxu1 %v208_v37 }
  0x8a   :  { %396 = vmatmul.mubr.f32.gmra.mxu0 %v181_v38 }
  0x8b   :  { %401 = vmatprep.mubr.f32.mxu0 %v184_v39  ;;  %v762_v39 = vld [vmem:[#allocation8 + $0x28] sm:$0xff] }
  0x8c   :  { %474 = vmatmul.mubr.f32.gmra.mxu1 %v207_v40 }
  0x8d   :  { %479 = vmatprep.mubr.f32.mxu1 %v210_v41 }
  0x8e   :  { %402 = vmatmul.mubr.f32.gmra.mxu0 %v183_v42 }
  0x8f   :  { %407 = vmatprep.mubr.f32.mxu0 %v186_v43 }
  0x90   :  { %480 = vmatmul.mubr.f32.gmra.mxu1 %v209_v44 }
  0x91   :  { %485 = vmatprep.mubr.f32.mxu1 %v212_v45 }
  0x92   :  { %408 = vmatmul.mubr.f32.gmra.mxu0 %v185_v46  ;;  %v787_v46 = vld [vmem:[#allocation8 + $0xf0] sm:$0xff] }
  0x93   :  { %413 = vmatprep.mubr.f32.mxu0 %v188_v47 }
  0x94   :  { %486 = vmatmul.mubr.f32.gmra.mxu1 %v211_v48 }
  0x96   :  { %414 = vmatmul.mubr.f32.gmra.mxu0 %v187_v49  ;;  %v763_v49 = vld [vmem:[#allocation8 + $0x30] sm:$0xff] }
 0x126   :  { %v343_v57 = vpop.f32.mrf.mxu0 }
 0x127   :  { %v657_v58 = vadd.f32 %v1133_v55, %v343_v57  ;;  %v788_v57 = vld [vmem:[#allocation8 + $0xf8] sm:$0xff] }
 0x128   :  { %v345_v60 = vpop.f32.mrf.mxu0  ;;  %v421_v61 = vpop.f32.mrf.mxu1 }
 0x129   :  { %v707_v62 = vmax.f32 %v657_v58, 0.0  ;;  %v658_v63 = vadd.f32 %v1135_v56, %v345_v60  ;;  %v683_v0 = vadd.f32 %v1133_v55, %v421_v61 }
 0x12a   :  { %v349_v3 = vpop.f32.mrf.mxu0  ;;  %v423_v4 = vpop.f32.mrf.mxu1 }
 0x12b   :  { %v807_v5 = vadd.f32 %v757_v59, %v707_v62  ;;  %v708_v6 = vmax.f32 %v658_v63, 0.0  ;;  %v733_v7 = vmax.f32 %v683_v0, 0.0  ;;  %v659_v8 = vadd.f32 %v1133_v55, %v349_v3  ;;  %v764_v62 = vld [vmem:[#allocation8 + $0x38] sm:$0xff]  ;;  %v789_v63 = vld [vmem:[#allocation8 + $0x100] sm:$0xff] }
 0x12c   :  { %v684_v10 = vadd.f32 %v1135_v56, %v423_v4  ;;  %v351_v11 = vpop.f32.mrf.mxu0  ;;  %v427_v12 = vpop.f32.mrf.mxu1 }
 0x12d   :  { %857 = vst [vmem:[#allocation9] sm:$0xff] %v807_v5  ;;  %v808_v13 = vadd.f32 %v758_v1, %v708_v6  ;;  %v833_v14 = vadd.f32 %v783_v2, %v733_v7  ;;  %v709_v15 = vmax.f32 %v659_v8, 0.0  ;;  %v660_v17 = vadd.f32 %v1135_v56, %v351_v11  ;;  %v765_v7 = vld [vmem:[#allocation8 + $0x40] sm:$0xff] }
 0x12e   :  { %v734_v18 = vmax.f32 %v684_v10, 0.0  ;;  %v685_v20 = vadd.f32 %v1133_v55, %v427_v12  ;;  %v355_v21 = vpop.f32.mrf.mxu0  ;;  %v429_v22 = vpop.f32.mrf.mxu1 }
 0x12f   :  { %858 = vst [vmem:[#allocation9 + $0x8] sm:$0xff] %v808_v13  ;;  %883 = vst [vmem:[#allocation9 + $0xd0] sm:$0xff] %v833_v14  ;;  %v809_v23 = vadd.f32 %v759_v9, %v709_v15  ;;  %v710_v24 = vmax.f32 %v660_v17, 0.0  ;;  %v661_v26 = vadd.f32 %v1133_v55, %v355_v21  ;;  %v686_v27 = vadd.f32 %v1135_v56, %v429_v22  ;;  %v790_v14 = vld [vmem:[#allocation8 + $0x108] sm:$0xff] }
 0x130   :  { %v834_v28 = vadd.f32 %v784_v16, %v734_v18  ;;  %v735_v29 = vmax.f32 %v685_v20, 0.0  ;;  %v357_v32 = vpop.f32.mrf.mxu0  ;;  %v433_v33 = vpop.f32.mrf.mxu1  ;;  %v766_v17 = vld [vmem:[#allocation8 + $0x48] sm:$0xff] }
 0x131   :  { %859 = vst [vmem:[#allocation9 + $0x10] sm:$0xff] %v809_v23  ;;  %v810_v34 = vadd.f32 %v760_v19, %v710_v24  ;;  %v711_v35 = vmax.f32 %v661_v26, 0.0  ;;  %v736_v36 = vmax.f32 %v686_v27, 0.0  ;;  %v662_v37 = vadd.f32 %v1135_v56, %v357_v32  ;;  %v791_v23 = vld [vmem:[#allocation8 + $0x110] sm:$0xff] }
 0x132   :  { %884 = vst [vmem:[#allocation9 + $0xd8] sm:$0xff] %v834_v28  ;;  %v835_v38 = vadd.f32 %v785_v25, %v735_v29  ;;  %v687_v40 = vadd.f32 %v1133_v55, %v433_v33  ;;  %v361_v41 = vpop.f32.mrf.mxu0  ;;  %v435_v42 = vpop.f32.mrf.mxu1  ;;  %v767_v28 = vld [vmem:[#allocation8 + $0x50] sm:$0xff]  ;;  %v792_v29 = vld [vmem:[#allocation8 + $0x118] sm:$0xff] }
 0x133   :  { %860 = vst [vmem:[#allocation9 + $0x18] sm:$0xff] %v810_v34  ;;  %v811_v43 = vadd.f32 %v761_v30, %v711_v35  ;;  %v836_v44 = vadd.f32 %v786_v31, %v736_v36  ;;  %v712_v45 = vmax.f32 %v662_v37, 0.0  ;;  %v663_v47 = vadd.f32 %v1133_v55, %v361_v41  ;;  %v768_v37 = vld [vmem:[#allocation8 + $0x58] sm:$0xff] }
 0x134   :  { %885 = vst [vmem:[#allocation9 + $0xe0] sm:$0xff] %v835_v38  ;;  %v737_v48 = vmax.f32 %v687_v40, 0.0  ;;  %v688_v50 = vadd.f32 %v1135_v56, %v435_v42  ;;  %v363_v51 = vpop.f32.mrf.mxu0  ;;  %v439_v52 = vpop.f32.mrf.mxu1 }
 0x135   :  { %861 = vst [vmem:[#allocation9 + $0x20] sm:$0xff] %v811_v43  ;;  %886 = vst [vmem:[#allocation9 + $0xe8] sm:$0xff] %v836_v44  ;;  %v812_v53 = vadd.f32 %v762_v39, %v712_v45  ;;  %v713_v54 = vmax.f32 %v663_v47, 0.0  ;;  %v664_v58 = vadd.f32 %v1135_v56, %v363_v51  ;;  %v689_v59 = vadd.f32 %v1133_v55, %v439_v52  ;;  %v793_v44 = vld [vmem:[#allocation8 + $0x120] sm:$0xff] }
 0x136   :  { %v837_v60 = vadd.f32 %v787_v46, %v737_v48  ;;  %v738_v61 = vmax.f32 %v688_v50, 0.0  ;;  %v367_v0 = vpop.f32.mrf.mxu0  ;;  %v441_v1 = vpop.f32.mrf.mxu1  ;;  %v769_v47 = vld [vmem:[#allocation8 + $0x60] sm:$0xff] }
 0x137   :  { %862 = vst [vmem:[#allocation9 + $0x28] sm:$0xff] %v812_v53  ;;  %v813_v2 = vadd.f32 %v763_v49, %v713_v54  ;;  %v714_v3 = vmax.f32 %v664_v58, 0.0  ;;  %v739_v4 = vmax.f32 %v689_v59, 0.0  ;;  %v665_v5 = vadd.f32 %v1133_v55, %v367_v0  ;;  %v794_v53 = vld [vmem:[#allocation8 + $0x128] sm:$0xff] }
 0x138   :  { %887 = vst [vmem:[#allocation9 + $0xf0] sm:$0xff] %v837_v60  ;;  %v838_v6 = vadd.f32 %v788_v57, %v738_v61  ;;  %v690_v8 = vadd.f32 %v1135_v56, %v441_v1  ;;  %v369_v9 = vpop.f32.mrf.mxu0  ;;  %v445_v10 = vpop.f32.mrf.mxu1  ;;  %v770_v60 = vld [vmem:[#allocation8 + $0x68] sm:$0xff]  ;;  %v795_v61 = vld [vmem:[#allocation8 + $0x130] sm:$0xff] }
 0x139   :  { %863 = vst [vmem:[#allocation9 + $0x30] sm:$0xff] %v813_v2  ;;  %v814_v11 = vadd.f32 %v764_v62, %v714_v3  ;;  %v839_v12 = vadd.f32 %v789_v63, %v739_v4  ;;  %v715_v13 = vmax.f32 %v665_v5, 0.0  ;;  %v666_v15 = vadd.f32 %v1135_v56, %v369_v9  ;;  %v771_v5 = vld [vmem:[#allocation8 + $0x70] sm:$0xff] }
 0x13a   :  { %888 = vst [vmem:[#allocation9 + $0xf8] sm:$0xff] %v838_v6  ;;  %v740_v16 = vmax.f32 %v690_v8, 0.0  ;;  %v691_v18 = vadd.f32 %v1133_v55, %v445_v10  ;;  %v373_v19 = vpop.f32.mrf.mxu0  ;;  %v447_v20 = vpop.f32.mrf.mxu1 }
 0x13b   :  { %864 = vst [vmem:[#allocation9 + $0x38] sm:$0xff] %v814_v11  ;;  %889 = vst [vmem:[#allocation9 + $0x100] sm:$0xff] %v839_v12  ;;  %v815_v21 = vadd.f32 %v765_v7, %v715_v13  ;;  %v716_v22 = vmax.f32 %v666_v15, 0.0  ;;  %v667_v24 = vadd.f32 %v1133_v55, %v373_v19  ;;  %v692_v25 = vadd.f32 %v1135_v56, %v447_v20  ;;  %v796_v12 = vld [vmem:[#allocation8 + $0x138] sm:$0xff] }
 0x13c   :  { %v840_v26 = vadd.f32 %v790_v14, %v740_v16  ;;  %v741_v27 = vmax.f32 %v691_v18, 0.0  ;;  %v375_v30 = vpop.f32.mrf.mxu0  ;;  %v451_v31 = vpop.f32.mrf.mxu1  ;;  %v772_v15 = vld [vmem:[#allocation8 + $0x78] sm:$0xff] }
 0x13d   :  { %865 = vst [vmem:[#allocation9 + $0x40] sm:$0xff] %v815_v21  ;;  %v816_v32 = vadd.f32 %v766_v17, %v716_v22  ;;  %v717_v33 = vmax.f32 %v667_v24, 0.0  ;;  %v742_v34 = vmax.f32 %v692_v25, 0.0  ;;  %v668_v35 = vadd.f32 %v1135_v56, %v375_v30  ;;  %v797_v21 = vld [vmem:[#allocation8 + $0x140] sm:$0xff] }
 0x13e   :  { %890 = vst [vmem:[#allocation9 + $0x108] sm:$0xff] %v840_v26  ;;  %v841_v36 = vadd.f32 %v791_v23, %v741_v27  ;;  %v693_v38 = vadd.f32 %v1133_v55, %v451_v31  ;;  %v379_v39 = vpop.f32.mrf.mxu0  ;;  %v453_v40 = vpop.f32.mrf.mxu1  ;;  %v773_v26 = vld [vmem:[#allocation8 + $0x80] sm:$0xff]  ;;  %v798_v27 = vld [vmem:[#allocation8 + $0x148] sm:$0xff] }
 0x13f   :  { %866 = vst [vmem:[#allocation9 + $0x48] sm:$0xff] %v816_v32  ;;  %v817_v41 = vadd.f32 %v767_v28, %v717_v33  ;;  %v842_v42 = vadd.f32 %v792_v29, %v742_v34  ;;  %v718_v43 = vmax.f32 %v668_v35, 0.0  ;;  %v669_v45 = vadd.f32 %v1133_v55, %v379_v39  ;;  %v774_v35 = vld [vmem:[#allocation8 + $0x88] sm:$0xff] }
 0x140   :  { %891 = vst [vmem:[#allocation9 + $0x110] sm:$0xff] %v841_v36  ;;  %v743_v46 = vmax.f32 %v693_v38, 0.0  ;;  %v694_v48 = vadd.f32 %v1135_v56, %v453_v40  ;;  %v381_v49 = vpop.f32.mrf.mxu0  ;;  %v457_v50 = vpop.f32.mrf.mxu1 }
 0x141   :  { %867 = vst [vmem:[#allocation9 + $0x50] sm:$0xff] %v817_v41  ;;  %892 = vst [vmem:[#allocation9 + $0x118] sm:$0xff] %v842_v42  ;;  %v818_v51 = vadd.f32 %v768_v37, %v718_v43  ;;  %v719_v52 = vmax.f32 %v669_v45, 0.0  ;;  %v670_v54 = vadd.f32 %v1135_v56, %v381_v49  ;;  %v695_v57 = vadd.f32 %v1133_v55, %v457_v50  ;;  %v799_v42 = vld [vmem:[#allocation8 + $0x150] sm:$0xff] }
 0x142   :  { %v843_v58 = vadd.f32 %v793_v44, %v743_v46  ;;  %v744_v59 = vmax.f32 %v694_v48, 0.0  ;;  %v385_v62 = vpop.f32.mrf.mxu0  ;;  %v459_v63 = vpop.f32.mrf.mxu1  ;;  %v775_v45 = vld [vmem:[#allocation8 + $0x90] sm:$0xff] }
 0x143   :  { %868 = vst [vmem:[#allocation9 + $0x58] sm:$0xff] %v818_v51  ;;  %v819_v0 = vadd.f32 %v769_v47, %v719_v52  ;;  %v720_v1 = vmax.f32 %v670_v54, 0.0  ;;  %v745_v2 = vmax.f32 %v695_v57, 0.0  ;;  %v671_v3 = vadd.f32 %v1133_v55, %v385_v62  ;;  %v800_v51 = vld [vmem:[#allocation8 + $0x158] sm:$0xff] }
 0x144   :  { %893 = vst [vmem:[#allocation9 + $0x120] sm:$0xff] %v843_v58  ;;  %v844_v4 = vadd.f32 %v794_v53, %v744_v59  ;;  %v696_v6 = vadd.f32 %v1135_v56, %v459_v63  ;;  %v387_v7 = vpop.f32.mrf.mxu0  ;;  %v463_v8 = vpop.f32.mrf.mxu1  ;;  %v776_v58 = vld [vmem:[#allocation8 + $0x98] sm:$0xff]  ;;  %v801_v59 = vld [vmem:[#allocation8 + $0x160] sm:$0xff] }
 0x145   :  { %869 = vst [vmem:[#allocation9 + $0x60] sm:$0xff] %v819_v0  ;;  %v820_v9 = vadd.f32 %v770_v60, %v720_v1  ;;  %v845_v10 = vadd.f32 %v795_v61, %v745_v2  ;;  %v721_v11 = vmax.f32 %v671_v3, 0.0  ;;  %v672_v13 = vadd.f32 %v1135_v56, %v387_v7  ;;  %v777_v3 = vld [vmem:[#allocation8 + $0xa0] sm:$0xff] }
 0x146   :  { %894 = vst [vmem:[#allocation9 + $0x128] sm:$0xff] %v844_v4  ;;  %v746_v14 = vmax.f32 %v696_v6, 0.0  ;;  %v697_v16 = vadd.f32 %v1133_v55, %v463_v8  ;;  %v391_v17 = vpop.f32.mrf.mxu0  ;;  %v465_v18 = vpop.f32.mrf.mxu1 }
 0x147   :  { %870 = vst [vmem:[#allocation9 + $0x68] sm:$0xff] %v820_v9  ;;  %895 = vst [vmem:[#allocation9 + $0x130] sm:$0xff] %v845_v10  ;;  %v821_v19 = vadd.f32 %v771_v5, %v721_v11  ;;  %v722_v20 = vmax.f32 %v672_v13, 0.0  ;;  %v673_v22 = vadd.f32 %v1133_v55, %v391_v17  ;;  %v698_v23 = vadd.f32 %v1135_v56, %v465_v18  ;;  %v802_v10 = vld [vmem:[#allocation8 + $0x168] sm:$0xff] }
 0x148   :  { %v846_v24 = vadd.f32 %v796_v12, %v746_v14  ;;  %v747_v25 = vmax.f32 %v697_v16, 0.0  ;;  %v393_v28 = vpop.f32.mrf.mxu0  ;;  %v469_v29 = vpop.f32.mrf.mxu1  ;;  %v778_v13 = vld [vmem:[#allocation8 + $0xa8] sm:$0xff] }
 0x149   :  { %871 = vst [vmem:[#allocation9 + $0x70] sm:$0xff] %v821_v19  ;;  %v822_v30 = vadd.f32 %v772_v15, %v722_v20  ;;  %v723_v31 = vmax.f32 %v673_v22, 0.0  ;;  %v748_v32 = vmax.f32 %v698_v23, 0.0  ;;  %v674_v33 = vadd.f32 %v1135_v56, %v393_v28  ;;  %v803_v19 = vld [vmem:[#allocation8 + $0x170] sm:$0xff] }
 0x14a   :  { %896 = vst [vmem:[#allocation9 + $0x138] sm:$0xff] %v846_v24  ;;  %v847_v34 = vadd.f32 %v797_v21, %v747_v25  ;;  %v699_v36 = vadd.f32 %v1133_v55, %v469_v29  ;;  %v397_v37 = vpop.f32.mrf.mxu0  ;;  %v471_v38 = vpop.f32.mrf.mxu1  ;;  %v779_v24 = vld [vmem:[#allocation8 + $0xb0] sm:$0xff]  ;;  %v804_v25 = vld [vmem:[#allocation8 + $0x178] sm:$0xff] }
 0x14b   :  { %872 = vst [vmem:[#allocation9 + $0x78] sm:$0xff] %v822_v30  ;;  %v823_v39 = vadd.f32 %v773_v26, %v723_v31  ;;  %v848_v40 = vadd.f32 %v798_v27, %v748_v32  ;;  %v724_v41 = vmax.f32 %v674_v33, 0.0  ;;  %v675_v43 = vadd.f32 %v1133_v55, %v397_v37  ;;  %v780_v33 = vld [vmem:[#allocation8 + $0xb8] sm:$0xff] }
 0x14c   :  { %897 = vst [vmem:[#allocation9 + $0x140] sm:$0xff] %v847_v34  ;;  %v749_v44 = vmax.f32 %v699_v36, 0.0  ;;  %v700_v46 = vadd.f32 %v1135_v56, %v471_v38  ;;  %v399_v47 = vpop.f32.mrf.mxu0  ;;  %v475_v48 = vpop.f32.mrf.mxu1 }
 0x14d   :  { %873 = vst [vmem:[#allocation9 + $0x80] sm:$0xff] %v823_v39  ;;  %898 = vst [vmem:[#allocation9 + $0x148] sm:$0xff] %v848_v40  ;;  %v824_v49 = vadd.f32 %v774_v35, %v724_v41  ;;  %v725_v50 = vmax.f32 %v675_v43, 0.0  ;;  %v676_v52 = vadd.f32 %v1135_v56, %v399_v47  ;;  %v701_v53 = vadd.f32 %v1133_v55, %v475_v48  ;;  %v805_v40 = vld [vmem:[#allocation8 + $0x180] sm:$0xff]  ;;  %v806_v48 = vld [vmem:[#allocation8 + $0x188] sm:$0xff] }
 0x14e   :  { %v849_v54 = vadd.f32 %v799_v42, %v749_v44  ;;  %v750_v57 = vmax.f32 %v700_v46, 0.0  ;;  %v403_v60 = vpop.f32.mrf.mxu0  ;;  %v477_v61 = vpop.f32.mrf.mxu1  ;;  %v781_v43 = vld [vmem:[#allocation8 + $0xc0] sm:$0xff] }
 0x14f   :  { %874 = vst [vmem:[#allocation9 + $0x88] sm:$0xff] %v824_v49  ;;  %v825_v62 = vadd.f32 %v775_v45, %v725_v50  ;;  %v726_v63 = vmax.f32 %v676_v52, 0.0  ;;  %v751_v0 = vmax.f32 %v701_v53, 0.0  ;;  %v677_v1 = vadd.f32 %v1133_v55, %v403_v60  ;;  %v782_v52 = vld [vmem:[#allocation8 + $0xc8] sm:$0xff] }
 0x150   :  { %899 = vst [vmem:[#allocation9 + $0x150] sm:$0xff] %v849_v54  ;;  %v850_v2 = vadd.f32 %v800_v51, %v750_v57  ;;  %v702_v4 = vadd.f32 %v1135_v56, %v477_v61  ;;  %v405_v5 = vpop.f32.mrf.mxu0  ;;  %v481_v6 = vpop.f32.mrf.mxu1 }
 0x151   :  { %875 = vst [vmem:[#allocation9 + $0x90] sm:$0xff] %v825_v62  ;;  %v826_v7 = vadd.f32 %v776_v58, %v726_v63  ;;  %v851_v8 = vadd.f32 %v801_v59, %v751_v0  ;;  %v727_v9 = vmax.f32 %v677_v1, 0.0  ;;  %v678_v11 = vadd.f32 %v1135_v56, %v405_v5 }
 0x152   :  { %900 = vst [vmem:[#allocation9 + $0x158] sm:$0xff] %v850_v2  ;;  %v752_v12 = vmax.f32 %v702_v4, 0.0  ;;  %v703_v14 = vadd.f32 %v1133_v55, %v481_v6  ;;  %v409_v15 = vpop.f32.mrf.mxu0  ;;  %v483_v16 = vpop.f32.mrf.mxu1 }
 0x153   :  { %876 = vst [vmem:[#allocation9 + $0x98] sm:$0xff] %v826_v7  ;;  %901 = vst [vmem:[#allocation9 + $0x160] sm:$0xff] %v851_v8  ;;  %v827_v17 = vadd.f32 %v777_v3, %v727_v9  ;;  %v728_v18 = vmax.f32 %v678_v11, 0.0  ;;  %v679_v20 = vadd.f32 %v1133_v55, %v409_v15  ;;  %v704_v21 = vadd.f32 %v1135_v56, %v483_v16 }
 0x154   :  { %v852_v22 = vadd.f32 %v802_v10, %v752_v12  ;;  %v753_v23 = vmax.f32 %v703_v14, 0.0  ;;  %v411_v26 = vpop.f32.mrf.mxu0  ;;  %v487_v27 = vpop.f32.mrf.mxu1 }
 0x155   :  { %877 = vst [vmem:[#allocation9 + $0xa0] sm:$0xff] %v827_v17  ;;  %v828_v28 = vadd.f32 %v778_v13, %v728_v18  ;;  %v729_v29 = vmax.f32 %v679_v20, 0.0  ;;  %v754_v30 = vmax.f32 %v704_v21, 0.0  ;;  %v680_v31 = vadd.f32 %v1135_v56, %v411_v26 }
 0x156   :  { %902 = vst [vmem:[#allocation9 + $0x168] sm:$0xff] %v852_v22  ;;  %v853_v32 = vadd.f32 %v803_v19, %v753_v23  ;;  %v705_v34 = vadd.f32 %v1133_v55, %v487_v27  ;;  %v415_v35 = vpop.f32.mrf.mxu0  ;;  %v489_v36 = vpop.f32.mrf.mxu1 }
 0x157   :  { %878 = vst [vmem:[#allocation9 + $0xa8] sm:$0xff] %v828_v28  ;;  %v829_v37 = vadd.f32 %v779_v24, %v729_v29  ;;  %v854_v38 = vadd.f32 %v804_v25, %v754_v30  ;;  %v730_v39 = vmax.f32 %v680_v31, 0.0  ;;  %v681_v41 = vadd.f32 %v1133_v55, %v415_v35 }
 0x158   :  { %903 = vst [vmem:[#allocation9 + $0x170] sm:$0xff] %v853_v32  ;;  %v755_v42 = vmax.f32 %v705_v34, 0.0  ;;  %v706_v44 = vadd.f32 %v1135_v56, %v489_v36  ;;  %v417_v45 = vpop.f32.mrf.mxu0 }
 0x159   :  { %879 = vst [vmem:[#allocation9 + $0xb0] sm:$0xff] %v829_v37  ;;  %904 = vst [vmem:[#allocation9 + $0x178] sm:$0xff] %v854_v38  ;;  %v830_v46 = vadd.f32 %v780_v33, %v730_v39  ;;  %v731_v47 = vmax.f32 %v681_v41, 0.0  ;;  %v682_v49 = vadd.f32 %v1135_v56, %v417_v45 }
 0x15a   :  { %v855_v50 = vadd.f32 %v805_v40, %v755_v42  ;;  %v756_v51 = vmax.f32 %v706_v44, 0.0 }
 0x15b   :  { %880 = vst [vmem:[#allocation9 + $0xb8] sm:$0xff] %v830_v46  ;;  %v831_v55 = vadd.f32 %v781_v43, %v731_v47  ;;  %v732_v53 = vmax.f32 %v682_v49, 0.0 }
 0x15c   :  { %905 = vst [vmem:[#allocation9 + $0x180] sm:$0xff] %v855_v50  ;;  %v856_v54 = vadd.f32 %v806_v48, %v756_v51 }
 0x15d   :  { %881 = vst [vmem:[#allocation9 + $0xc0] sm:$0xff] %v831_v55  ;;  %v832_v57 = vadd.f32 %v782_v52, %v732_v53 }
 0x15e   :  { %906 = vst [vmem:[#allocation9 + $0x188] sm:$0xff] %v856_v54 }
 0x15f   :  { %882 = vst [vmem:[#allocation9 + $0xc8] sm:$0xff] %v832_v57 }
 0x160   :  { %1066 = shalt.err (!%p1063_p5)
}
 0x161   :  { %918 = dma.vmem_to_hbm [thread:$0]  %s913_s5, 6400, %s1197_s4, [#allocation5], %s1083_s20, %s1083_s20, %s1084_s21  }
 0x162   :  { %1079 = dma.done.wait [#allocation5], 6400  }
 0x163   :  { %1080 = vsyncadd [#allocation5], 4294960896 }
 0x164   :  { %922 = vsyncpa [#allocation4], 1 }
 0x165   :  { %923 = vsyncpa [#allocation7], 1 }
 0x166   :  { %924 = vsyncpa [#allocation5], 1 }

</bundles_post_ra>
